<compile_context>
chip_gen: v5e
topology: v5e:2x2
jax: 0.10.0
libtpu: 0.0.40
codegen_flags: <defaults>
</compile_context>

<pallas_src>
import numpy as np
import jax
import jax.numpy as jnp
from jax.experimental import pallas as pl
from jax.experimental.pallas import tpu as pltpu

IN_SHAPE = 5
CTX_FEATURES = 6
EMBED = IN_SHAPE + CTX_FEATURES        # 11  (attention embed dim)
MID_IN = IN_SHAPE + EMBED              # 16  (middle_layer input)
MID_OUT = 11                           # middle_layer output
HIDDEN = (32, 32)
OUT_SHAPE = 5
X_ROWS = EMBED + 1                     # 12  kernel input rows: [inputs; context; flow_time]
NUM_HEADS = 1                          # TODO(synk): default num_heads=4 does not divide embed_dim=11
HEAD_DIM = EMBED // NUM_HEADS
SCALE = 1.0 / float(np.sqrt(HEAD_DIM))

TB_MAX = 8192                          # max batch tile (lanes); per-step VMEM stays < 1 MB

# ---- packed weight slab: one (208, 128) f32 array, every block starts on an 8-row boundary ----
SLAB_COLS = 128
R_A = 0        # A  (11, 12)  fused first layer (x^T -> mid^T), zero column for flow_time
R_BA = 16      # ba (11, 1)
R_H1 = 32      # H1 (32, 11)  = w1[:11]^T
R_T1 = 64      # T1 (32, 12)  only column 11 nonzero (= w1[11]^T, the flow_time row)
R_B1 = 96      # b1 (32, 1)
R_H2 = 128     # H2 (32, 32)  = w2^T
R_B2 = 160     # b2 (32, 1)
R_H3 = 192     # H3 ( 5, 32)  = w3^T
R_B3 = 200     # b3 ( 5, 1)
SLAB_ROWS = 208


def attention_mlp_kernel(xT_ref, slab_ref, out_ref):
    # x^T: (12, TB) bf16 -> f32.  Rows 0-4 inputs, 5-10 context, 11 flow_time.
    x = xT_ref[...].astype(jnp.float32)

    # Static, 8-row-aligned slices of the packed weight slab (slab block index is
    # constant across the grid, so it is DMA'd once; slices are a few vregs each).
    A = slab_ref[R_A:R_A + MID_OUT, :X_ROWS]            # (11, 12)
    ba = slab_ref[R_BA:R_BA + MID_OUT, 0:1]             # (11, 1)
    H1 = slab_ref[R_H1:R_H1 + HIDDEN[0], :MID_OUT]      # (32, 11)
    T1 = slab_ref[R_T1:R_T1 + HIDDEN[0], :X_ROWS]       # (32, 12)
    b1 = slab_ref[R_B1:R_B1 + HIDDEN[0], 0:1]           # (32, 1)
    H2 = slab_ref[R_H2:R_H2 + HIDDEN[1], :HIDDEN[0]]    # (32, 32)
    b2 = slab_ref[R_B2:R_B2 + HIDDEN[1], 0:1]           # (32, 1)
    H3 = slab_ref[R_H3:R_H3 + OUT_SHAPE, :HIDDEN[1]]    # ( 5, 32)
    b3 = slab_ref[R_B3:R_B3 + OUT_SHAPE, 0:1]           # ( 5, 1)

    # attention (len-1 seq -> softmax weight == 1) + middle_layer, pre-fused host-side:
    #   mid^T = relu(A @ x^T + ba)          (A's flow_time column is zero)
    mid = jnp.maximum(jnp.dot(A, x, preferred_element_type=jnp.float32) + ba, 0.0)

    # network: Linear(12,32)+ReLU -> Linear(32,32)+ReLU -> Linear(32,5)
    # flow_time enters layer 1 through T1 @ x (only its column 11 is nonzero).
    h1 = jnp.maximum(jnp.dot(H1, mid, preferred_element_type=jnp.float32)
                     + jnp.dot(T1, x, preferred_element_type=jnp.float32) + b1, 0.0)
    h2 = jnp.maximum(jnp.dot(H2, h1, preferred_element_type=jnp.float32) + b2, 0.0)
    out_ref[...] = jnp.dot(H3, h2, preferred_element_type=jnp.float32) + b3


def init_params(key):
    ks = jax.random.split(key, 16)

    def u(k, shape, fan_in):
        bound = 1.0 / np.sqrt(fan_in)
        return jax.random.uniform(k, shape, jnp.float32, -bound, bound)

    p = {}
    # MultiheadAttention: in_proj (q/k/v) + out_proj, stored (in, out)
    p["wq"] = u(ks[0], (EMBED, EMBED), EMBED)
    p["wk"] = u(ks[1], (EMBED, EMBED), EMBED)
    p["wv"] = u(ks[2], (EMBED, EMBED), EMBED)
    p["bq"] = jnp.zeros((1, EMBED), jnp.float32)
    p["bk"] = jnp.zeros((1, EMBED), jnp.float32)
    p["bv"] = jnp.zeros((1, EMBED), jnp.float32)
    p["wo"] = u(ks[3], (EMBED, EMBED), EMBED)
    p["bo"] = u(ks[4], (1, EMBED), EMBED)
    # middle_layer Linear(16, 11)
    p["wmid"] = u(ks[5], (MID_IN, MID_OUT), MID_IN)
    p["bmid"] = u(ks[6], (1, MID_OUT), MID_IN)
    # network: Linear(12,32) -> ReLU -> Linear(32,32) -> ReLU -> Linear(32,5)
    p["w1"] = u(ks[7], (MID_OUT + 1, HIDDEN[0]), MID_OUT + 1)
    p["b1"] = u(ks[8], (1, HIDDEN[0]), MID_OUT + 1)
    p["w2"] = u(ks[9], (HIDDEN[0], HIDDEN[1]), HIDDEN[0])
    p["b2"] = u(ks[10], (1, HIDDEN[1]), HIDDEN[0])
    p["w3"] = u(ks[11], (HIDDEN[1], OUT_SHAPE), HIDDEN[1])
    p["b3"] = u(ks[12], (1, OUT_SHAPE), HIDDEN[1])
    return p


def pack_weights(p):
    """Host-side algebraic fusion + packing into one (208, 128) f32 slab.

    Build ONCE per parameter set (hoisted out of the forward) and reuse across calls.
    Weights are stored transposed (out, in) for the feature-major kernel.
    """
    # attn_out = x @ (wv @ wo) + (bv @ wo + bo)   (softmax over length-1 seq == 1)
    wvo = p["wv"] @ p["wo"]                       # (11, 11)
    bvo = p["bv"] @ p["wo"] + p["bo"]             # (1, 11)
    wmid_x = p["wmid"][:IN_SHAPE, :]              # (5, 11)
    wmid_a = p["wmid"][IN_SHAPE:, :]              # (11, 11)
    # mid = relu(x @ W_fused + b_fused)
    w_fused = (jnp.zeros((EMBED, MID_OUT), jnp.float32).at[:IN_SHAPE, :].set(wmid_x)
               + wvo @ wmid_a)                    # (11, 11)
    b_fused = bvo @ wmid_a + p["bmid"]            # (1, 11)

    A = jnp.zeros((MID_OUT, X_ROWS), jnp.float32).at[:, :EMBED].set(w_fused.T)
    T1 = jnp.zeros((HIDDEN[0], X_ROWS), jnp.float32).at[:, EMBED].set(p["w1"][MID_OUT, :])

    slab = jnp.zeros((SLAB_ROWS, SLAB_COLS), jnp.float32)

    def put(s, row, a):
        return s.at[row:row + a.shape[0], :a.shape[1]].set(a)

    slab = put(slab, R_A, A)
    slab = put(slab, R_BA, b_fused.T)             # (11, 1)
    slab = put(slab, R_H1, p["w1"][:MID_OUT, :].T)  # (32, 11)
    slab = put(slab, R_T1, T1)                    # (32, 12)
    slab = put(slab, R_B1, p["b1"].T)             # (32, 1)
    slab = put(slab, R_H2, p["w2"].T)             # (32, 32)
    slab = put(slab, R_B2, p["b2"].T)             # (32, 1)
    slab = put(slab, R_H3, p["w3"].T)             # ( 5, 32)
    slab = put(slab, R_B3, p["b3"].T)             # ( 5, 1)
    return slab


def _round_up(x, m):
    return -(-x // m) * m


def _pick_tb(B, tb_max=TB_MAX):
    """Batch tile (lane count): multiple of 256, capped at tb_max.  Whenever the batch
    allows, keep >= 2 grid steps so v7x's two TensorCores both get work (the batch
    grid axis is marked "parallel"); on v5e/v6e a single-step grid is optimal for
    small batches and is what tiny B falls back to."""
    Bp = _round_up(B, 256)
    if Bp <= 256:
        return 256
    steps = max(2, -(-Bp // tb_max))
    return _round_up(-(-Bp // steps), 256)


def attention_mlp_forward(inputs, context, flow_time, slab, *, tb=None):
    """inputs (B,5), context (B,6), flow_time (B,1), slab = pack_weights(params).

    Returns (B, 5) float32 (PyTorch layout).  The kernel itself computes and stores a
    lane-dense feature-major (5, Bp) result; the final transpose back to (B, 5) is the
    only post-processing and can be skipped by consumers that accept feature-major.
    """
    B = inputs.shape[0]
    if tb is None:
        tb = _pick_tb(B)
    Bp = _round_up(B, tb)

    # One fused host-side relayout pass: transpose + bf16 cast + feature concat.
    # Row layout: 0-4 inputs, 5-10 context, 11 flow_time.
    xT = jnp.concatenate(
        [inputs.T.astype(jnp.bfloat16),
         context.T.astype(jnp.bfloat16),
         flow_time.T.astype(jnp.bfloat16)], axis=0)          # (12, B)
    if Bp != B:
        xT = jnp.pad(xT, ((0, 0), (0, Bp - B)))              # zero rows: harmless, sliced off

    out_t = pl.pallas_call(
        attention_mlp_kernel,
        out_shape=jax.ShapeDtypeStruct((OUT_SHAPE, Bp), jnp.float32),
        grid=(Bp // tb,),
        in_specs=[
            pl.BlockSpec((X_ROWS, tb), lambda i: (0, i)),            # activations, streamed
            pl.BlockSpec((SLAB_ROWS, SLAB_COLS), lambda i: (0, 0)),  # weight slab, DMA'd once
        ],
        out_specs=pl.BlockSpec((OUT_SHAPE, tb), lambda i: (0, i)),   # lane-dense store
        compiler_params=pltpu.CompilerParams(
            dimension_semantics=("parallel",)),                      # megacore-shardable batch axis
    )(xT, slab)

    return out_t[:, :B].T                                            # back to PyTorch (B, 5)


def reference_forward(inputs, context, flow_time, p):
    # Unfused f32 reference (includes the q/k path; softmax over a singleton is exactly 1).
    x = jnp.concatenate([inputs, context], axis=-1)
    q = (x @ p["wq"] + p["bq"]) * SCALE
    k = x @ p["wk"] + p["bk"]
    v = x @ p["wv"] + p["bv"]
    s = jnp.sum(q * k, axis=-1, keepdims=True)
    attn = jnp.exp(s - s) * v
    ao = attn @ p["wo"] + p["bo"]
    mid = jax.nn.relu(jnp.concatenate([inputs, ao], axis=-1) @ p["wmid"] + p["bmid"])
    net_in = jnp.concatenate([mid, flow_time], axis=-1)
    h1 = jax.nn.relu(net_in @ p["w1"] + p["b1"])
    h2 = jax.nn.relu(h1 @ p["w2"] + p["b2"])
    return h2 @ p["w3"] + p["b3"]


if __name__ == "__main__":
    key = jax.random.PRNGKey(0)
    kx, kc, kt, kp = jax.random.split(key, 4)

    B = 512                                   # small demo batch -> 2 grid steps of 256 rows
    inputs = jax.random.normal(kx, (B, IN_SHAPE), jnp.float32)
    context = jax.random.normal(kc, (B, CTX_FEATURES), jnp.float32)
    flow_time = jax.random.uniform(kt, (B, 1), jnp.float32)
    params = init_params(kp)

    # Weight slab built once (hoisted out of the forward), reused across calls.
    slab = jax.block_until_ready(pack_weights(params))

    fwd = jax.jit(attention_mlp_forward)
    out = jax.block_until_ready(fwd(inputs, context, flow_time, slab))

    # 1) Exact-algebra check: feed the same bf16-quantized activations through the
    #    unfused f32 reference -> only f32 reassociation differences remain.
    q8 = lambda a: a.astype(jnp.bfloat16).astype(jnp.float32)
    ref_q = reference_forward(q8(inputs), q8(context), q8(flow_time), params)
    np.testing.assert_allclose(np.asarray(out), np.asarray(ref_q), rtol=1e-4, atol=1e-5)

    # 2) End-to-end check vs the pure-f32 reference (tolerance covers the bf16
    #    quantization of the streamed activations).
    ref = reference_forward(inputs, context, flow_time, params)
    np.testing.assert_allclose(np.asarray(out), np.asarray(ref), rtol=2e-2, atol=2e-2)

    print("KERNEL_OK")
</pallas_src>

<mosaic_0001>
module attributes {stable_mosaic.version = 11 : i64} {
  func.func @attention_mlp_kernel(%arg0: i32, %arg1: memref<12x256xbf16, #tpu.memory_space<vmem>>, %arg2: memref<208x128xf32, #tpu.memory_space<vmem>>, %arg3: memref<5x256xf32, #tpu.memory_space<vmem>>) attributes {dimension_semantics = [#tpu.dimension_semantics<parallel>], iteration_bounds = array<i64: 2>, scalar_prefetch = 0 : i64, scratch_operands = 0 : i64, tpu.core_type = #tpu.core_type<tc>, window_params = [{transform_indices = @transform_0, window_bounds = array<i64: 12, 256>}, {pipeline_mode = #tpu.pipeline_mode<synchronous>, transform_indices = @transform_1, window_bounds = array<i64: 208, 128>}, {transform_indices = @transform_2, window_bounds = array<i64: 5, 256>}]} {
    %c0 = arith.constant 0 : index
    %c0_0 = arith.constant 0 : index
    %0 = vector.load %arg1[%c0, %c0_0] : memref<12x256xbf16, #tpu.memory_space<vmem>>, vector<12x256xbf16>
    %1 = arith.extf %0 : vector<12x256xbf16> to vector<12x256xf32>
    %c0_1 = arith.constant 0 : index
    %c0_2 = arith.constant 0 : index
    %2 = vector.load %arg2[%c0_1, %c0_2] : memref<208x128xf32, #tpu.memory_space<vmem>>, vector<11x12xf32>
    %c16 = arith.constant 16 : index
    %c0_3 = arith.constant 0 : index
    %3 = vector.load %arg2[%c16, %c0_3] : memref<208x128xf32, #tpu.memory_space<vmem>>, vector<11x1xf32>
    %c32 = arith.constant 32 : index
    %c0_4 = arith.constant 0 : index
    %4 = vector.load %arg2[%c32, %c0_4] : memref<208x128xf32, #tpu.memory_space<vmem>>, vector<32x11xf32>
    %c64 = arith.constant 64 : index
    %c0_5 = arith.constant 0 : index
    %5 = vector.load %arg2[%c64, %c0_5] : memref<208x128xf32, #tpu.memory_space<vmem>>, vector<32x12xf32>
    %c96 = arith.constant 96 : index
    %c0_6 = arith.constant 0 : index
    %6 = vector.load %arg2[%c96, %c0_6] : memref<208x128xf32, #tpu.memory_space<vmem>>, vector<32x1xf32>
    %c128 = arith.constant 128 : index
    %c0_7 = arith.constant 0 : index
    %7 = vector.load %arg2[%c128, %c0_7] : memref<208x128xf32, #tpu.memory_space<vmem>>, vector<32x32xf32>
    %c160 = arith.constant 160 : index
    %c0_8 = arith.constant 0 : index
    %8 = vector.load %arg2[%c160, %c0_8] : memref<208x128xf32, #tpu.memory_space<vmem>>, vector<32x1xf32>
    %c192 = arith.constant 192 : index
    %c0_9 = arith.constant 0 : index
    %9 = vector.load %arg2[%c192, %c0_9] : memref<208x128xf32, #tpu.memory_space<vmem>>, vector<5x32xf32>
    %c200 = arith.constant 200 : index
    %c0_10 = arith.constant 0 : index
    %10 = vector.load %arg2[%c200, %c0_10] : memref<208x128xf32, #tpu.memory_space<vmem>>, vector<5x1xf32>
    %cst = arith.constant dense<0.000000e+00> : vector<11x256xf32>
    %11 = tpu.matmul %2, %1, %cst {dimension_numbers = #tpu.dot_dimension_numbers<[1], [0], [0], [1], [0, 0, 1, 1], [], []>} : vector<11x12xf32>, vector<12x256xf32>, vector<11x256xf32> -> vector<11x256xf32>
    %12 = vector.broadcast %3 : vector<11x1xf32> to vector<11x256xf32>
    %13 = arith.addf %11, %12 : vector<11x256xf32>
    %cst_11 = arith.constant 0.000000e+00 : f32
    %14 = vector.broadcast %cst_11 : f32 to vector<11x256xf32>
    %15 = arith.maximumf %13, %14 : vector<11x256xf32>
    %cst_12 = arith.constant dense<0.000000e+00> : vector<32x256xf32>
    %16 = tpu.matmul %4, %15, %cst_12 {dimension_numbers = #tpu.dot_dimension_numbers<[1], [0], [0], [1], [0, 0, 1, 1], [], []>} : vector<32x11xf32>, vector<11x256xf32>, vector<32x256xf32> -> vector<32x256xf32>
    %cst_13 = arith.constant dense<0.000000e+00> : vector<32x256xf32>
    %17 = tpu.matmul %5, %1, %cst_13 {dimension_numbers = #tpu.dot_dimension_numbers<[1], [0], [0], [1], [0, 0, 1, 1], [], []>} : vector<32x12xf32>, vector<12x256xf32>, vector<32x256xf32> -> vector<32x256xf32>
    %18 = arith.addf %16, %17 : vector<32x256xf32>
    %19 = vector.broadcast %6 : vector<32x1xf32> to vector<32x256xf32>
    %20 = arith.addf %18, %19 : vector<32x256xf32>
    %cst_14 = arith.constant 0.000000e+00 : f32
    %21 = vector.broadcast %cst_14 : f32 to vector<32x256xf32>
    %22 = arith.maximumf %20, %21 : vector<32x256xf32>
    %cst_15 = arith.constant dense<0.000000e+00> : vector<32x256xf32>
    %23 = tpu.matmul %7, %22, %cst_15 {dimension_numbers = #tpu.dot_dimension_numbers<[1], [0], [0], [1], [0, 0, 1, 1], [], []>} : vector<32x32xf32>, vector<32x256xf32>, vector<32x256xf32> -> vector<32x256xf32>
    %24 = vector.broadcast %8 : vector<32x1xf32> to vector<32x256xf32>
    %25 = arith.addf %23, %24 : vector<32x256xf32>
    %cst_16 = arith.constant 0.000000e+00 : f32
    %26 = vector.broadcast %cst_16 : f32 to vector<32x256xf32>
    %27 = arith.maximumf %25, %26 : vector<32x256xf32>
    %cst_17 = arith.constant dense<0.000000e+00> : vector<5x256xf32>
    %28 = tpu.matmul %9, %27, %cst_17 {dimension_numbers = #tpu.dot_dimension_numbers<[1], [0], [0], [1], [0, 0, 1, 1], [], []>} : vector<5x32xf32>, vector<32x256xf32>, vector<5x256xf32> -> vector<5x256xf32>
    %29 = vector.broadcast %10 : vector<5x1xf32> to vector<5x256xf32>
    %30 = arith.addf %28, %29 : vector<5x256xf32>
    %c0_18 = arith.constant 0 : index
    %c0_19 = arith.constant 0 : index
    %31 = vector.load %arg3[%c0_18, %c0_19] : memref<5x256xf32, #tpu.memory_space<vmem>>, vector<5x256xf32>
    tpu.vector_store %arg3[%c0_18, %c0_19], %30 {strides = array<i32>} : memref<5x256xf32, #tpu.memory_space<vmem>>, vector<5x256xf32>,
    return
  }
  func.func @transform_0(%arg0: i32) -> (i32, i32) {
    %c0_i32 = arith.constant 0 : i32
    %c0_i32_0 = arith.constant 0 : i32
    return %c0_i32, %arg0 : i32, i32
  }
  func.func @transform_1(%arg0: i32) -> (i32, i32) {
    %c0_i32 = arith.constant 0 : i32
    %c0_i32_0 = arith.constant 0 : i32
    %c0_i32_1 = arith.constant 0 : i32
    return %c0_i32, %c0_i32_0 : i32, i32
  }
  func.func @transform_2(%arg0: i32) -> (i32, i32) {
    %c0_i32 = arith.constant 0 : i32
    %c0_i32_0 = arith.constant 0 : i32
    return %c0_i32, %arg0 : i32, i32
  }
}

</mosaic_0001>

<bundles_post_ra>
// kernel: attention_mlp_forward.1
= control target key start
LH: loop header
LB: loop body
LE: loop exit
PB: predicated region body
PF: predicated region fallthrough
CT: control target
= control target key end

     0   :  { %7 = vsyncpa [#allocation4], 0  ;;  %s1113_s0 = inlined_call_operand.vmem [shape: bf16[12,512], index: 0, kind: input, shape index: {}]   ;;  %s1114_s1 = inlined_call_operand.hbm [shape: f32[208,128], index: 1, kind: input, shape index: {}]   ;;  %s1115_s2 = inlined_call_operand.hbm [shape: f32[5,512], index: 2, kind: output, shape index: {}]  }
   0x1   :  { %8 = vsyncpa [#allocation5], 0 }
   0x2   :  { %10 = vsyncpa [#allocation5 + $0x1], 0  ;;  %s961_s9 = smov 0   ;;  %s963_s10 = smov 0  }
   0x3   :  { %s965_s11 = smov 0   ;;  %s967_s12 = smov 0  }
   0x4 LB: > { %s982_s13 = sadd.s32 4294967295, %s940_s12   ;;  %s734_s14 = sadd.s32 4294967294, %s940_s12   ;;  %s940_s12 = sphi %s967_s12, %s1123_s12   ;;  %s936_s11 = sphi %s965_s11, %s1122_s11   ;;  %s932_s10 = sphi %s963_s10, %s1121_s10   ;;  %s928_s9 = sphi %s961_s9, %s1120_s9  }
   0x5   : > { %s986_s15 = sadd.s32 1, %s940_s12   ;;  %s23_s16 = sadd.s32 1, %s936_s11 }
   0x6   : > { %s20_s17 = ssub.s32 %s940_s12, %s986_s15  ;;  %p30_p0 = scmp.ne.s32.totalorder %s936_s11, %s932_s10 }
   0x7   : > { %p21_p1 = scmp.eq.s32.totalorder %s20_s17, 0  ;;  %p31_p2 = scmp.eq.s32.totalorder %s940_s12, 0 }
   0x8   : > { %p81_p3 = scmp.eq.s32.totalorder %s982_s13, 1  ;;  %p86_p4 = scmp.ne.s32.totalorder %s932_s10, %s928_s9 }
   0x9   : > { %s998_s18 = scalar_select %p21_p1, %s936_s11, %s23_s16  }
   0xa   : > { %p1000_p5 = por %p31_p2, %p30_p0  ;;  %p1004_p6 = por %p81_p3, %p30_p0 }
   0xb   : > { %p87_p7 = scmp.eq.s32.totalorder %s734_s14, 1  ;;  %p735_p8 = scmp.ge.s32.totalorder %s940_s12, 1 }
   0xc   : > { %p94_p9 = scmp.lt.s32.totalorder %s940_s12, 3  ;;  %p802_p11 = scmp.eq.s32.totalorder %s982_s13, 0 }
   0xd   : > { %p1010_p10 = por %p87_p7, %p86_p4  ;;  %s105_s25 = sshll.u32 %s1114_s1, 4  ;;  %s106_s25 = int_to_ptr.hbm [resolvable:$true] %s105_s25 }
   0xe   : > { %p1015_p12 = pnand %p735_p8, %p94_p9  ;;  %s942_s26 = smov [#allocation3]  }
   0xf   : > { %s107_s27 = sshll.u32 %s942_s26, 4  ;;  %s943_s28 = smov 128   ;;  %s108_s27 = int_to_ptr.vmem [resolvable:$true] %s107_s27 }
  0x10   : > { %p794_p13 = pneg %p1015_p12  ;;  %s944_s29 = smov 8  }
  0x11   : > { %p737_p1 = scmp.ge.s32.totalorder %s940_s12, 2 }
  0x12   : > { %p795_p0 = pnand %p802_p11, %p794_p13 }
  0x13   : > { %117 = sbr.rel (%p737_p1) target bundleno = 30 (0x1e), region = 20 }
  0x14   : > { %797 = dma.hbm_to_vmem [thread:$0]  (!%p795_p0), %s106_s25, 3328, %s108_s27, [#allocation4], %s943_s28, %s943_s28, %s944_s29  }
  0x18   : > { %120 = sbr.rel (!%p1000_p5) target bundleno = 30 (0x1e), region = 24  ;;  %s122_s30 = sand.u32 (%p1000_p5), 1, %s936_s11  }
  0x19   : > { %s786_s3 = sshll.u32 (%p1000_p5), %s940_s12, 3  ;;  %s738_s4 = sshll.u32 (%p1000_p5), %s122_s30, 4 }
  0x1a   : > { %s127_s7 = scalar_lea.vmem (%p1000_p5), %s1113_s0, %s786_s3  ;;  %s124_s8 = scalar_lea.vmem (%p1000_p5), [#allocation2], %s738_s4 }
  0x1b   : > { %v158_v0 = vld [vmem:[%s127_s7] sm:$0xff] (%p1000_p5)  ;;  %v160_v1 = vld [vmem:[%s127_s7 + $0x10] sm:$0xff] (%p1000_p5) }
  0x1c   : > { %159 = vst [vmem:[%s124_s8] sm:$0xff] (%p1000_p5), %v158_v0 }
  0x1d   : > { %161 = vst [vmem:[%s124_s8 + $0x8] sm:$0xff] %v160_v1 }
  0x1e PF: > { %170 = sbr.rel (%p1015_p12) target bundleno = 646 (0x286), region = 62  ;;  %s173_s14 = sand.u32 (!%p1015_p12), 1, %s932_s10  }
  0x1f   : > { %s1041_s16 = sshll.u32 (!%p1015_p12), %s173_s14, 4 }
  0x20   : > { %s175_s17 = scalar_lea.vmem (!%p1015_p12), [#allocation2], %s1041_s16 }
  0x23   : > { %919 = dma.done.wait (%p802_p11), [#allocation4], 3328  }
  0x24   : > { %921 = vsyncadd (%p802_p11), [#allocation4], 4294963968  ;;  %v945_v2 = vmov 0   ;;  %v210_v3 = vld [vmem:[#allocation3 + $0x18] sm:$0x7]  ;;  %vm250_vm0 = vcmask 1043456  }
  0x25   : > { %841 = vset.pattern.permute.xlu0 %v945_v2  ;;  %842 = vset.pattern.permute.xlu1 %v945_v2  ;;  %v202_v4 = vld [vmem:[%s175_s17 + $0x8] sm:$0x33]  ;;  %v201_v5 = vld [vmem:[%s175_s17] sm:$0xff]  ;;  %vm243_vm1 = vcmask 97280   ;;  %vm390_vm2 = vcmask 1042432   ;;  %vm377_vm3 = vcmask 89088  }
  0x26   : > { %843 = vset.pattern.permute.xlu2 %v945_v2  ;;  %240 = vperm.xlu0 %841, %v210_v3   ;;  %v205_v6 = vunpack.c.l.bf16 %v202_v4  ;;  %v206_v7 = vunpack.c.h.bf16 %v202_v4  ;;  %v203_v8 = vunpack.c.l.bf16 %v201_v5  ;;  %v204_v9 = vunpack.c.h.bf16 %v201_v5  ;;  %v207_v10 = vld [vmem:[#allocation3] sm:$0xff]  ;;  %v209_v11 = vld [vmem:[#allocation3 + $0x10] sm:$0xff]  ;;  %v208_v12 = vld [vmem:[#allocation3 + $0x8] sm:$0x7]  ;;  %s787_s19 = sshll.u32 %s982_s13, 4  ;;  %s198_s25 = scalar_lea.vmem [#allocation6], %s1041_s16 }
  0x27   : > { %v230_v13 = vld [vmem:[#allocation3 + $0xb8] sm:$0xff]  ;;  %v227_v14 = vld [vmem:[#allocation3 + $0xa0] sm:$0xff]  ;;  %v216_v16 = vld [vmem:[#allocation3 + $0x48] sm:$0xff]  ;;  %vm511_vm4 = vcmask 261120   ;;  %s652_s24 = scalar_lea.hbm %s1115_s2, %s787_s19  ;;  %s654_s26 = sshll.u32 %s198_s25, 4  ;;  %s655_s26 = int_to_ptr.vmem [resolvable:$true] %s654_s26 }
  0x28   : > { %745 = vmatpush.msk.msra.mxu0 %vm250_vm0, %v205_v6  ;;  %748 = vmatpush.msk.msra.mxu1 %vm250_vm0, %v206_v7  ;;  %v215_v15 = vld [vmem:[#allocation3 + $0x40] sm:$0xff]  ;;  %v222_v17 = vld [vmem:[#allocation3 + $0x78] sm:$0xff]  ;;  %v217_v18 = vld [vmem:[#allocation3 + $0x50] sm:$0xff]  ;;  %s656_s27 = sshll.u32 %s652_s24, 4  ;;  %s641_s28 = scalar_lea.sflag [#allocation5], %s173_s14  ;;  %s657_s27 = int_to_ptr.hbm [resolvable:$true] %s656_s27 }
  0x29   : > { %751 = vmatpush.msk.msra.mxu2 %vm250_vm0, %v205_v6  ;;  %756 = vmatpush.msk.msra.mxu3 %vm250_vm0, %v206_v7  ;;  %v221_v19 = vld [vmem:[#allocation3 + $0x70] sm:$0xff]  ;;  %v218_v23 = vld [vmem:[#allocation3 + $0x58] sm:$0xff]  ;;  %v220_v30 = vld [vmem:[#allocation3 + $0x68] sm:$0xff]  ;;  %s888_s13 = sshra.s32 %s657_s27, 4  ;;  %s894_s4 = scalar_lea.hbm %s1115_s2, 32  ;;  %s889_s13 = int_to_ptr.hbm [resolvable:$true] %s888_s13 }
  0x2a   : > { %272 = vmatpush.msra.mxu0 %v203_v8  ;;  %295 = vmatpush.msra.mxu1 %v204_v9  ;;  %v229_v24 = vld [vmem:[#allocation3 + $0xb0] sm:$0xff]  ;;  %v232_v31 = vld [vmem:[#allocation3 + $0xc8] sm:$0x1f]  ;;  %v211_v37 = vld [vmem:[#allocation3 + $0x20] sm:$0xff]  ;;  %s890_s29 = scalar_lea.hbm %s889_s13, 16  ;;  %p895_p5 = scmp.lt.s32.totalorder %s889_s13, %s1115_s2 }
  0x2b   : > { %746 = vmatmul.msk.f32.vlgmr.msra.gmra.mxu0 %vm243_vm1, %v207_v10  ;;  %749 = vmatmul.msk.f32.vlgmr.msra.gmra.mxu1 %vm243_vm1, %v207_v10  ;;  %v219_v39 = vld [vmem:[#allocation3 + $0x60] sm:$0xff]  ;;  %v212_v40 = vld [vmem:[#allocation3 + $0x28] sm:$0xff]  ;;  %v213_v42 = vld [vmem:[#allocation3 + $0x30] sm:$0xff]  ;;  %p891_p2 = scmp.ne.s32.totalorder %s889_s13, %s890_s29  ;;  %p896_p7 = scmp.lt.s32.totalorder %s894_s4, %s890_s29 }
  0x2c   : > { %334 = vmatpush.msra.mxu2 %v203_v8  ;;  %363 = vmatpush.msra.mxu3 %v204_v9  ;;  %v228_v41 = vld [vmem:[#allocation3 + $0xa8] sm:$0xff]  ;;  %v214_v43 = vld [vmem:[#allocation3 + $0x38] sm:$0xff] }
  0x2d   : > { %752 = vmatmul.msk.f32.vlgmr.msra.gmra.mxu2 %vm243_vm1, %v215_v15  ;;  %757 = vmatmul.msk.f32.vlgmr.msra.gmra.mxu3 %vm243_vm1, %v215_v15  ;;  %p892_p3 = pnand %p891_p2, %p1004_p6  ;;  %p897_p8 = por %p896_p7, %p895_p5 }
  0x2e   : > { %235 = vperm.xlu0 %841, %v209_v11   ;;  %472 = vperm.xlu1 %842, %v222_v17  }
  0x2f   : > { %462 = vperm.xlu2 %843, %v220_v30   ;;  %p893_p4 = pneg %p892_p3 }
  0x31   : > { %p898_p9 = pnand %p897_p8, %p893_p4 }
  0x33   : > { %747 = vmatmul.msk.f32.gmra.mxu0 %vm243_vm1, %v208_v12  ;;  %750 = vmatmul.msk.f32.gmra.mxu1 %vm243_vm1, %v208_v12 }
  0x35   : > { %753 = vmatmul.msk.f32.gmra.mxu2 %vm243_vm1, %v216_v16  ;;  %758 = vmatmul.msk.f32.gmra.mxu3 %vm243_vm1, %v216_v16 }
  0x36   : > { %508 = vperm.xlu0 %841, %v230_v13   ;;  %467 = vperm.xlu1 %842, %v221_v19  }
  0x37   : > { %457 = vperm.xlu2 %843, %v219_v39  }
  0x3d   : > { %754 = vmatmul.msk.f32.gmra.mxu2 %vm243_vm1, %v217_v18  ;;  %759 = vmatmul.msk.f32.gmra.mxu3 %vm243_vm1, %v217_v18 }
  0x3e   : > { %493 = vperm.xlu0 %841, %v227_v14   ;;  %503 = vperm.xlu1 %842, %v229_v24  }
  0x3f   : > { %498 = vperm.xlu2 %843, %v228_v41  }
  0x45   : > { %755 = vmatmul.msk.f32.gmra.mxu2 %vm243_vm1, %v218_v23  ;;  %760 = vmatmul.msk.f32.gmra.mxu3 %vm243_vm1, %v218_v23  ;;  %v223_v23 = vld [vmem:[#allocation3 + $0x80] sm:$0xff] }
  0x46   : > { %592 = vperm.xlu1 %842, %v232_v31  }
  0x89   : > { %v463_v57 = vpop.permute.xlu2 %462 }
  0x91   : > { %v458_v9 = vpop.permute.xlu2 %457 }
  0x98   : > { %v241_v20 = vpop.permute.xlu0 %240 }
  0xa0   : > { %v236_v25 = vpop.permute.xlu0 %235  ;;  %v473_v54 = vpop.permute.xlu1 %472 }
  0xa8   : > { %v274_v21 = vpop.f32.mrf.mxu0  ;;  %v297_v22 = vpop.f32.mrf.mxu1 }
  0xa9   : > { %v275_v27 = vadd.f32 %v274_v21, %v236_v25  ;;  %v298_v32 = vadd.f32 %v297_v22, %v236_v25  ;;  %v468_v2 = vpop.permute.xlu1 %467  ;;  %v224_v25 = vld [vmem:[#allocation3 + $0x88] sm:$0xff] }
  0xab   : > { %v303_v36 = vmax.f32 %v275_v27, 0.0  ;;  %v304_v38 = vmax.f32 %v298_v32, 0.0  ;;  %v226_v27 = vld [vmem:[#allocation3 + $0x98] sm:$0xff] }
  0xb0   : > { %v277_v26 = vpop.f32.mrf.mxu0  ;;  %v300_v29 = vpop.f32.mrf.mxu1 }
  0xb1   : > { %v278_v28 = vadd.f32 %v277_v26, %v241_v20  ;;  %v301_v33 = vadd.f32 %v300_v29, %v241_v20  ;;  %v336_v44 = vpop.f32.mrf.mxu2  ;;  %v365_v45 = vpop.f32.mrf.mxu3  ;;  %v225_v26 = vld [vmem:[#allocation3 + $0x90] sm:$0xff] }
  0xb3   : > { %v305_v34 = vmax.f32 %v278_v28, 0.0  ;;  %v306_v35 = vmax.f32 %v301_v33, 0.0 }
  0xb5   : > { %761 = vmatpush.msk.msrb.mxu0 %vm390_vm2, %v305_v34  ;;  %766 = vmatpush.msk.msrb.mxu1 %vm390_vm2, %v306_v35  ;;  %v509_v34 = vpop.permute.xlu0 %508  ;;  %v504_v35 = vpop.permute.xlu1 %503 }
  0xb7   : > { %412 = vmatpush.msrb.mxu0 %v303_v36  ;;  %441 = vmatpush.msrb.mxu1 %v304_v38 }
  0xb8   : > { %762 = vmatmul.msk.f32.vlgmr.msrb.gmra.mxu0 %vm377_vm3, %v211_v37  ;;  %767 = vmatmul.msk.f32.vlgmr.msrb.gmra.mxu1 %vm377_vm3, %v211_v37 }
  0xb9   : > { %v339_v48 = vpop.f32.mrf.mxu2  ;;  %v368_v49 = vpop.f32.mrf.mxu3 }
  0xc0   : > { %763 = vmatmul.msk.f32.gmra.mxu0 %vm377_vm3, %v212_v40  ;;  %768 = vmatmul.msk.f32.gmra.mxu1 %vm377_vm3, %v212_v40  ;;  %v499_v40 = vpop.permute.xlu2 %498 }
  0xc1   : > { %v342_v52 = vpop.f32.mrf.mxu2  ;;  %v371_v53 = vpop.f32.mrf.mxu3 }
  0xc8   : > { %764 = vmatmul.msk.f32.gmra.mxu0 %vm377_vm3, %v213_v42  ;;  %769 = vmatmul.msk.f32.gmra.mxu1 %vm377_vm3, %v213_v42 }
  0xc9   : > { %v345_v58 = vpop.f32.mrf.mxu2  ;;  %v374_v60 = vpop.f32.mrf.mxu3 }
  0xd0   : > { %765 = vmatmul.msk.f32.gmra.mxu0 %vm377_vm3, %v214_v43  ;;  %770 = vmatmul.msk.f32.gmra.mxu1 %vm377_vm3, %v214_v43 }
 0x135   : > { %v414_v46 = vpop.f32.mrf.mxu0  ;;  %v443_v47 = vpop.f32.mrf.mxu1 }
 0x136   : > { %v415_v5 = vadd.f32 %v414_v46, %v336_v44  ;;  %v444_v8 = vadd.f32 %v443_v47, %v365_v45  ;;  %v494_v45 = vpop.permute.xlu0 %493 }
 0x138   : > { %v475_v16 = vadd.f32 %v458_v9, %v415_v5  ;;  %v476_v18 = vadd.f32 %v458_v9, %v444_v8 }
 0x13a   : > { %v483_v22 = vmax.f32 %v475_v16, 0.0  ;;  %v484_v24 = vmax.f32 %v476_v18, 0.0 }
 0x13d   : > { %v417_v50 = vpop.f32.mrf.mxu0  ;;  %v446_v51 = vpop.f32.mrf.mxu1 }
 0x13e   : > { %v418_v63 = vadd.f32 %v417_v50, %v339_v48  ;;  %v447_v3 = vadd.f32 %v446_v51, %v368_v49 }
 0x140   : > { %v477_v13 = vadd.f32 %v463_v57, %v418_v63  ;;  %v478_v15 = vadd.f32 %v463_v57, %v447_v3  ;;  %v593_v57 = vpop.permute.xlu1 %592 }
 0x142   : > { %v485_v20 = vmax.f32 %v477_v13, 0.0  ;;  %v486_v21 = vmax.f32 %v478_v15, 0.0 }
 0x145   : > { %v420_v55 = vpop.f32.mrf.mxu0  ;;  %v449_v56 = vpop.f32.mrf.mxu1 }
 0x146   : > { %v421_v59 = vadd.f32 %v420_v55, %v342_v52  ;;  %v450_v61 = vadd.f32 %v449_v56, %v371_v53  ;;  %v231_v55 = vld [vmem:[#allocation3 + $0xc0] sm:$0x1f] }
 0x148   : > { %v479_v7 = vadd.f32 %v468_v2, %v421_v59  ;;  %v480_v11 = vadd.f32 %v468_v2, %v450_v61 }
 0x14a   : > { %v487_v17 = vmax.f32 %v479_v7, 0.0  ;;  %v488_v19 = vmax.f32 %v480_v11, 0.0 }
 0x14d   : > { %v423_v62 = vpop.f32.mrf.mxu0  ;;  %v452_v1 = vpop.f32.mrf.mxu1 }
 0x14e   : > { %v424_v0 = vadd.f32 %v423_v62, %v345_v58  ;;  %v453_v4 = vadd.f32 %v452_v1, %v374_v60 }
 0x150   : > { %v481_v6 = vadd.f32 %v473_v54, %v424_v0  ;;  %v482_v10 = vadd.f32 %v473_v54, %v453_v4 }
 0x152   : > { %v489_v12 = vmax.f32 %v481_v6, 0.0  ;;  %v490_v14 = vmax.f32 %v482_v10, 0.0 }
 0x154   : > { %536 = vmatpush.msrb.mxu2 %v489_v12  ;;  %565 = vmatpush.msrb.mxu3 %v490_v14 }
 0x156   : > { %537 = vmatpush.msrb.mxu2 %v487_v17  ;;  %566 = vmatpush.msrb.mxu3 %v488_v19 }
 0x158   : > { %538 = vmatpush.msrb.mxu2 %v485_v20  ;;  %567 = vmatpush.msrb.mxu3 %v486_v21 }
 0x15a   : > { %539 = vmatpush.msrb.mxu2 %v483_v22  ;;  %568 = vmatpush.msrb.mxu3 %v484_v24 }
 0x15b   : > { %771 = vmatmul.msk.f32.vlgmr.msrb.gmra.mxu2 %vm511_vm4, %v223_v23  ;;  %775 = vmatmul.msk.f32.vlgmr.msrb.gmra.mxu3 %vm511_vm4, %v223_v23 }
 0x163   : > { %772 = vmatmul.msk.f32.gmra.mxu2 %vm511_vm4, %v224_v25  ;;  %776 = vmatmul.msk.f32.gmra.mxu3 %vm511_vm4, %v224_v25 }
 0x16b   : > { %773 = vmatmul.msk.f32.gmra.mxu2 %vm511_vm4, %v225_v26  ;;  %777 = vmatmul.msk.f32.gmra.mxu3 %vm511_vm4, %v225_v26 }
 0x173   : > { %774 = vmatmul.msk.f32.gmra.mxu2 %vm511_vm4, %v226_v27  ;;  %778 = vmatmul.msk.f32.gmra.mxu3 %vm511_vm4, %v226_v27 }
 0x1de   : > { %v541_v28 = vpop.f32.mrf.mxu2  ;;  %v570_v29 = vpop.f32.mrf.mxu3 }
 0x1df   : > { %v542_v48 = vadd.f32 %v541_v28, %v494_v45  ;;  %v571_v50 = vadd.f32 %v570_v29, %v494_v45 }
 0x1e1   : > { %v582_v54 = vmax.f32 %v542_v48, 0.0  ;;  %v583_v56 = vmax.f32 %v571_v50, 0.0 }
 0x1e6   : > { %v544_v30 = vpop.f32.mrf.mxu2  ;;  %v573_v31 = vpop.f32.mrf.mxu3 }
 0x1e7   : > { %v545_v43 = vadd.f32 %v544_v30, %v499_v40  ;;  %v574_v46 = vadd.f32 %v573_v31, %v499_v40 }
 0x1e9   : > { %v584_v52 = vmax.f32 %v545_v43, 0.0  ;;  %v585_v53 = vmax.f32 %v574_v46, 0.0 }
 0x1ee   : > { %v547_v32 = vpop.f32.mrf.mxu2  ;;  %v576_v33 = vpop.f32.mrf.mxu3 }
 0x1ef   : > { %v548_v37 = vadd.f32 %v547_v32, %v504_v35  ;;  %v577_v41 = vadd.f32 %v576_v33, %v504_v35 }
 0x1f1   : > { %v586_v49 = vmax.f32 %v548_v37, 0.0  ;;  %v587_v51 = vmax.f32 %v577_v41, 0.0 }
 0x1f6   : > { %v550_v36 = vpop.f32.mrf.mxu2  ;;  %v579_v39 = vpop.f32.mrf.mxu3 }
 0x1f7   : > { %v551_v38 = vadd.f32 %v550_v36, %v509_v34  ;;  %v580_v42 = vadd.f32 %v579_v39, %v509_v34 }
 0x1f9   : > { %v588_v44 = vmax.f32 %v551_v38, 0.0  ;;  %v589_v47 = vmax.f32 %v580_v42, 0.0 }
 0x1fb   : > { %610 = vmatpush.msra.mxu0 %v588_v44  ;;  %630 = vmatpush.msra.mxu1 %v589_v47 }
 0x1fd   : > { %611 = vmatpush.msra.mxu0 %v586_v49  ;;  %631 = vmatpush.msra.mxu1 %v587_v51 }
 0x1ff   : > { %612 = vmatpush.msra.mxu0 %v584_v52  ;;  %632 = vmatpush.msra.mxu1 %v585_v53 }
 0x201   : > { %613 = vmatpush.msra.mxu0 %v582_v54  ;;  %633 = vmatpush.msra.mxu1 %v583_v56 }
 0x202   : > { %779 = vmatmul.msk.f32.vlgmr.msra.gmra.mxu0 %vm511_vm4, %v231_v55  ;;  %780 = vmatmul.msk.f32.vlgmr.msra.gmra.mxu1 %vm511_vm4, %v231_v55 }
 0x27f   : > { %v615_v58 = vpop.f32.mrf.mxu0  ;;  %v635_v60 = vpop.f32.mrf.mxu1 }
 0x280   : > { %v616_v59 = vadd.f32 %v615_v58, %v593_v57  ;;  %v636_v61 = vadd.f32 %v635_v60, %v593_v57 }
 0x282   : > { %638 = vst [vmem:[%s198_s25] sm:$0x1f] %v616_v59 }
 0x283   : > { %639 = vst [vmem:[%s198_s25 + $0x8] sm:$0x1f] %v636_v61 }
 0x284   : > { %901 = shalt.err (!%p898_p9)
}
 0x285   : > { %792 = dma.vmem_to_hbm [thread:$0]  (%p1004_p6), %s655_s26, 256, %s657_s27, %s641_s28  }
 0x286 PF: > { %s668_s7 = sand.u32 1, %s928_s9   ;;  %p799_p11 = pnand %p737_p1, %p1010_p10 }
 0x287   : > { %s669_s8 = scalar_lea.sflag [#allocation5], %s668_s7 }
 0x288   : > { %p800_p12 = pneg %p799_p11 }
 0x28a   : > { %923 = dma.done.wait (%p800_p12), %s669_s8, 256  }
 0x28b   : > { %925 = vsyncadd (%p800_p12), %s669_s8, 4294967040  ;;  %p13_p13 = scmp.ge.s32.totalorder %s986_s15, 4   ;;  %s1120_s9 = smov %s932_s10 }
 0x28c   : > { %s1121_s10 = smov %s936_s11  ;;  %s1122_s11 = smov %s998_s18 }
 0x28d   : > { %s1123_s12 = smov %s986_s15  ;;  %15 = sbr.rel (!%p13_p13) target bundleno = 4 (0x4), region = 111 }
 0x292   :  { %675 = vsyncpa [#allocation4], 1 }
 0x293   :  { %677 = vsyncpa [#allocation4 + $0x1], 1 }
 0x294   :  { %678 = vsyncpa [#allocation5], 1 }
 0x295   :  { %680 = vsyncpa [#allocation5 + $0x1], 1 }

</bundles_post_ra>
